<compile_context>
chip_gen: v6e
topology: v6e:2x2x1
jax: 0.10.0
libtpu: 0.0.40
codegen_flags: <defaults>
</compile_context>

<pallas_src>
import functools

import jax
import jax.numpy as jnp
from jax.experimental import pallas as pl
from jax.experimental.pallas import tpu as pltpu

EPS = 1e-5
_LANE = 128
_SUBLANE = 8


def _round_up(v, m):
    return (v + m - 1) // m * m


def _vmem_limits():
    """Generation-aware VMEM (limit, tile budget) in bytes.

    v7x: 64 MiB physical  -> ~48 MiB limit.
    v5e/v6e: 128 MiB physical -> 96 MiB limit.
    Falls back to the v7x-safe value if the query is unavailable.
    """
    cap = 64 * 1024 * 1024
    try:
        info = pltpu.get_tpu_info()
        cap = int(getattr(info, "vmem_capacity_bytes", cap)) or cap
    except Exception:  # non-TPU / older runtime: keep the conservative default
        pass
    limit = min((cap * 3) // 4, 96 * 1024 * 1024)
    budget = max(limit - 2 * 1024 * 1024, limit // 2)  # headroom for compiler scratch
    return limit, budget


# --------------------------------------------------------------------------- #
# Fast path: everything resident in VMEM, single kernel invocation.           #
# --------------------------------------------------------------------------- #
def _residual_single_step_kernel(x_ref, wt_ref, gamma_ref, beta_ref, out_ref, *,
                                 batch, pad_rows):
    h = jnp.dot(x_ref[...], wt_ref[...], preferred_element_type=jnp.float32)
    inv_n = 1.0 / batch
    mean = jnp.sum(h, axis=0, keepdims=True) * inv_n
    d = h - mean
    # Padded batch rows hold h == 0 (bias dropped), so each contributes mean^2
    # to sum((h - mean)^2); subtract that to get the exact real-row variance.
    ssq = jnp.sum(d * d, axis=0, keepdims=True) - pad_rows * (mean * mean)
    var = jnp.maximum(ssq * inv_n, 0.0)
    scale = gamma_ref[...] * jax.lax.rsqrt(var + EPS)
    shift = beta_ref[...] - mean * scale
    out_ref[...] = jnp.maximum(h * scale + shift, 0.0)


# --------------------------------------------------------------------------- #
# Large-batch path: grid = (phase, batch_tile), h cached in VMEM if it fits.   #
# --------------------------------------------------------------------------- #
def _residual_two_phase_kernel(x_ref, wt_ref, gamma_ref, beta_ref, out_ref,
                               sum_ref, ssq_ref, scale_ref, shift_ref,
                               *h_cache, batch):
    """phase 0: h = x @ W^T per tile; accumulate per-feature sum / sum-of-squares
               and (optionally) stash h in the resident VMEM cache.
    phase 1: finalize fused BN scale/shift once (tile 0), then apply
               scale/shift + ReLU per tile, reusing the cached h when present.

    Padded batch rows are all-zero (bias dropped) so they add exactly zero to the
    statistics; the divisor uses the true batch size.
    """
    cached = len(h_cache) == 1
    phase = pl.program_id(0)
    tile = pl.program_id(1)

    @pl.when(phase == 0)
    def _accumulate():
        h = jnp.dot(x_ref[...], wt_ref[...], preferred_element_type=jnp.float32)

        @pl.when(tile == 0)
        def _init():
            sum_ref[...] = jnp.zeros_like(sum_ref)
            ssq_ref[...] = jnp.zeros_like(ssq_ref)

        sum_ref[...] += jnp.sum(h, axis=0, keepdims=True)
        ssq_ref[...] += jnp.sum(h * h, axis=0, keepdims=True)
        if cached:
            h_cache[0][tile] = h

    @pl.when(phase == 1)
    def _apply():
        @pl.when(tile == 0)
        def _finalize():
            inv_n = 1.0 / batch
            mean = sum_ref[...] * inv_n
            var = jnp.maximum(ssq_ref[...] * inv_n - mean * mean, 0.0)
            scale = gamma_ref[...] * jax.lax.rsqrt(var + EPS)
            scale_ref[...] = scale
            shift_ref[...] = beta_ref[...] - mean * scale

        if cached:
            h = h_cache[0][tile]
        else:
            h = jnp.dot(x_ref[...], wt_ref[...], preferred_element_type=jnp.float32)
        out_ref[...] = jnp.maximum(h * scale_ref[...] + shift_ref[...], 0.0)


def _residual_forward_impl(x, w, b, gamma, beta, max_block_rows,
                           force_two_phase, allow_h_cache):
    del b  # exactly cancelled by training-mode BatchNorm batch-mean subtraction
    B, I = x.shape
    O = w.shape[0]

    I_pad = _round_up(max(I, 1), _LANE)
    O_pad = _round_up(max(O, 1), _LANE)
    # TODO(synk): for layers with I, O >= 256 on v6e/v7x, round feature dims to
    # multiples of 256 to fill the 2x256^2 MXU (irrelevant at this module's sizes).

    vmem_limit, vmem_budget = _vmem_limits()
    f32 = jnp.float32

    wt_p = jnp.pad(w.astype(f32), ((0, O_pad - O), (0, I_pad - I))).T  # (I_pad, O_pad)
    g_p = jnp.pad(gamma.astype(f32), (0, O_pad - O)).reshape(1, O_pad)
    be_p = jnp.pad(beta.astype(f32), (0, O_pad - O)).reshape(1, O_pad)

    # ----------------------------- fast path ------------------------------ #
    B_pad_min = _round_up(B, _SUBLANE)
    single_bytes = 4 * (B_pad_min * I_pad          # x (resident)
                        + I_pad * O_pad            # weight
                        + 2 * O_pad                # gamma / beta
                        + 3 * B_pad_min * O_pad)   # out + ~2 h-sized temporaries
    if (not force_two_phase) and single_bytes <= vmem_budget:
        B_pad = B_pad_min
        x_p = jnp.pad(x.astype(f32), ((0, B_pad - B), (0, I_pad - I)))
        out_h = pl.pallas_call(
            functools.partial(_residual_single_step_kernel,
                              batch=float(B), pad_rows=float(B_pad - B)),
            out_shape=jax.ShapeDtypeStruct((B_pad, O_pad), f32),
            compiler_params=pltpu.CompilerParams(vmem_limit_bytes=vmem_limit),
        )(x_p, wt_p, g_p, be_p)
        return jnp.concatenate([out_h[:B, :O], x.astype(f32)], axis=1)

    # --------------------------- two-phase path --------------------------- #
    def tile_bytes(tb, with_cache):
        b_pad = _round_up(B, tb)
        words = (2 * tb * I_pad        # x tile (double-buffered)
                 + 2 * tb * O_pad      # out tile (double-buffered)
                 + 2 * I_pad * O_pad   # weight (resident; counted 2x, conservative)
                 + 4 * O_pad           # gamma / beta (double-buffered)
                 + 32 * O_pad)         # four (1, O_pad) scratches, 8-row padded
        if with_cache:
            words += b_pad * O_pad     # resident h cache
        return 4 * words

    def choose_tile(with_cache):
        tb = max(_SUBLANE, min(_round_up(B, _SUBLANE),
                               _round_up(max_block_rows, _SUBLANE)))
        while tb > _SUBLANE and tile_bytes(tb, with_cache) > vmem_budget:
            tb = max(_SUBLANE, _round_up(tb // 2, _SUBLANE))
        return tb, tile_bytes(tb, with_cache) <= vmem_budget

    cache_h = bool(allow_h_cache)
    tb, fits = choose_tile(cache_h)
    if cache_h and not fits:
        cache_h = False                # fall back to recomputing h in phase 1
        tb, _ = choose_tile(False)

    B_pad = _round_up(B, tb)
    nb = B_pad // tb
    x_p = jnp.pad(x.astype(f32), ((0, B_pad - B), (0, I_pad - I)))

    if cache_h:
        # Phase 1 reads h from the VMEM cache; pin x's block to 0 so the x HBM
        # stream is not replayed during the apply phase.
        x_index = lambda p, i: ((1 - p) * i, 0)
    else:
        x_index = lambda p, i: (i, 0)

    scratch_shapes = [
        pltpu.VMEM((1, O_pad), f32),   # per-feature sum
        pltpu.VMEM((1, O_pad), f32),   # per-feature sum of squares
        pltpu.VMEM((1, O_pad), f32),   # fused BN scale  (gamma * rsqrt(var + eps))
        pltpu.VMEM((1, O_pad), f32),   # fused BN shift  (beta - mean * scale)
    ]
    if cache_h:
        scratch_shapes.append(pltpu.VMEM((nb, tb, O_pad), f32))

    out_h = pl.pallas_call(
        functools.partial(_residual_two_phase_kernel, batch=float(B)),
        out_shape=jax.ShapeDtypeStruct((B_pad, O_pad), f32),
        grid_spec=pltpu.PrefetchScalarGridSpec(
            num_scalar_prefetch=0,
            grid=(2, nb),              # axis 0 = phase (stats/apply), axis 1 = batch tile
            in_specs=[
                pl.BlockSpec((tb, I_pad), x_index),
                pl.BlockSpec((I_pad, O_pad), lambda p, i: (0, 0)),
                pl.BlockSpec((1, O_pad), lambda p, i: (0, 0)),
                pl.BlockSpec((1, O_pad), lambda p, i: (0, 0)),
            ],
            # Phase 0 pins the output block to 0 and never writes it; phase-1
            # tile 0 maps to the same block and fully overwrites it before the
            # first flush, so no garbage ever reaches the real output rows.
            out_specs=pl.BlockSpec((tb, O_pad), lambda p, i: (p * i, 0)),
            scratch_shapes=scratch_shapes,
        ),
        compiler_params=pltpu.CompilerParams(
            # Both axes carry sequential deps through the stats / h-cache scratches.
            # TODO(synk): on v7x, shard the batch axis across the two TensorCores
            # (per-core partial sums + tiny cross-core combine) for very large B.
            dimension_semantics=("arbitrary", "arbitrary"),
            vmem_limit_bytes=vmem_limit,
        ),
    )(x_p, wt_p, g_p, be_p)

    # Residual concat stays outside the kernel: x never traverses the kernel.
    return jnp.concatenate([out_h[:B, :O], x.astype(f32)], axis=1)


_residual_forward_jit = jax.jit(_residual_forward_impl, static_argnums=(5, 6, 7))


def residual_forward(x, w, b, gamma, beta, *, max_block_rows=1024,
                     force_two_phase=False, allow_h_cache=True):
    """x: (B, I); w: (O, I); b, gamma, beta: (O,).  Returns (B, O + I) float32.

    Training-mode BatchNorm1d semantics (per-batch statistics), matching the
    PyTorch module's default forward.  The Linear bias is accepted for interface
    parity but is mathematically removed by the batch-mean subtraction, so it is
    never sent to the kernel (it would have to be reinstated for eval-mode BN).
    """
    return _residual_forward_jit(x, w, b, gamma, beta, int(max_block_rows),
                                 bool(force_two_phase), bool(allow_h_cache))


def residual_reference(x, w, b, gamma, beta):
    """Pure-JAX reference mirroring the PyTorch module (training-mode BN, with bias)."""
    h = x @ w.T + b
    mean = jnp.mean(h, axis=0, keepdims=True)
    var = jnp.mean((h - mean) ** 2, axis=0, keepdims=True)
    h = (h - mean) / jnp.sqrt(var + EPS)
    h = h * gamma + beta
    h = jnp.maximum(h, 0.0)
    return jnp.concatenate([h, x], axis=1)


def _make_params(key, B, I, O):
    kx, kw, kb, kg, kbe = jax.random.split(key, 5)
    x = jax.random.normal(kx, (B, I), dtype=jnp.float32)
    bound = 1.0 / jnp.sqrt(jnp.float32(I))
    w = jax.random.uniform(kw, (O, I), minval=-bound, maxval=bound, dtype=jnp.float32)
    b = jax.random.uniform(kb, (O,), minval=-bound, maxval=bound, dtype=jnp.float32)
    gamma = 1.0 + 0.1 * jax.random.normal(kg, (O,), dtype=jnp.float32)
    beta = 0.1 * jax.random.normal(kbe, (O,), dtype=jnp.float32)
    return x, w, b, gamma, beta


if __name__ == "__main__":
    key = jax.random.PRNGKey(0)
    k1, k2, k3 = jax.random.split(key, 3)

    # Case 1: nominal module sizes (batch=8, in=32, out=32) -> single-step fast path.
    B, I, O = 8, 32, 32
    x, w, b, gamma, beta = _make_params(k1, B, I, O)
    out = jax.block_until_ready(residual_forward(x, w, b, gamma, beta))
    ref = residual_reference(x, w, b, gamma, beta)
    assert out.shape == (B, O + I), out.shape
    assert jnp.allclose(out, ref, atol=1e-4, rtol=1e-4), float(jnp.max(jnp.abs(out - ref)))

    # Case 2: forced multi-tile two-phase path with the resident h cache
    # (non-multiple batch + padded rows + non-lane-multiple features).
    B2, I2, O2 = 13, 32, 48
    x2, w2, b2, gamma2, beta2 = _make_params(k2, B2, I2, O2)
    out2 = jax.block_until_ready(
        residual_forward(x2, w2, b2, gamma2, beta2,
                         max_block_rows=8, force_two_phase=True))
    ref2 = residual_reference(x2, w2, b2, gamma2, beta2)
    assert out2.shape == (B2, O2 + I2), out2.shape
    assert jnp.allclose(out2, ref2, atol=1e-4, rtol=1e-4), float(
        jnp.max(jnp.abs(out2 - ref2)))

    # Case 3: forced two-phase recompute fallback (h cache disabled).
    B3, I3, O3 = 24, 40, 32
    x3, w3, b3, gamma3, beta3 = _make_params(k3, B3, I3, O3)
    out3 = jax.block_until_ready(
        residual_forward(x3, w3, b3, gamma3, beta3,
                         max_block_rows=8, force_two_phase=True,
                         allow_h_cache=False))
    ref3 = residual_reference(x3, w3, b3, gamma3, beta3)
    assert out3.shape == (B3, O3 + I3), out3.shape
    assert jnp.allclose(out3, ref3, atol=1e-4, rtol=1e-4), float(
        jnp.max(jnp.abs(out3 - ref3)))

    print("KERNEL_OK")
</pallas_src>

<mosaic_0001>
module attributes {stable_mosaic.version = 11 : i64} {
  func.func @_residual_single_step_kernel(%arg0: memref<8x128xf32, #tpu.memory_space<vmem>>, %arg1: memref<128x128xf32, #tpu.memory_space<vmem>>, %arg2: memref<1x128xf32, #tpu.memory_space<vmem>>, %arg3: memref<1x128xf32, #tpu.memory_space<vmem>>, %arg4: memref<8x128xf32, #tpu.memory_space<vmem>>) attributes {dimension_semantics = [], scalar_prefetch = 0 : i64, scratch_operands = 0 : i64, tpu.core_type = #tpu.core_type<tc>} {
    %c0 = arith.constant 0 : index
    %c0_0 = arith.constant 0 : index
    %0 = vector.load %arg0[%c0, %c0_0] : memref<8x128xf32, #tpu.memory_space<vmem>>, vector<8x128xf32>
    %c0_1 = arith.constant 0 : index
    %c0_2 = arith.constant 0 : index
    %1 = vector.load %arg1[%c0_1, %c0_2] : memref<128x128xf32, #tpu.memory_space<vmem>>, vector<128x128xf32>
    %cst = arith.constant dense<0.000000e+00> : vector<8x128xf32>
    %2 = tpu.matmul %0, %1, %cst {dimension_numbers = #tpu.dot_dimension_numbers<[1], [0], [0], [1], [0, 0, 1, 1], [], []>} : vector<8x128xf32>, vector<128x128xf32>, vector<8x128xf32> -> vector<8x128xf32>
    %cst_3 = arith.constant dense<0.000000e+00> : vector<128xf32>
    %3 = vector.multi_reduction <add>, %2, %cst_3 [0] : vector<8x128xf32> to vector<128xf32>
    %4 = vector.shape_cast %3 : vector<128xf32> to vector<1x128xf32>
    %cst_4 = arith.constant 1.250000e-01 : f32
    %5 = vector.broadcast %cst_4 : f32 to vector<1x128xf32>
    %6 = arith.mulf %4, %5 : vector<1x128xf32>
    %7 = vector.broadcast %6 : vector<1x128xf32> to vector<8x128xf32>
    %8 = arith.subf %2, %7 : vector<8x128xf32>
    %9 = arith.mulf %8, %8 : vector<8x128xf32>
    %cst_5 = arith.constant dense<0.000000e+00> : vector<128xf32>
    %10 = vector.multi_reduction <add>, %9, %cst_5 [0] : vector<8x128xf32> to vector<128xf32>
    %11 = vector.shape_cast %10 : vector<128xf32> to vector<1x128xf32>
    %12 = arith.mulf %6, %6 : vector<1x128xf32>
    %cst_6 = arith.constant 0.000000e+00 : f32
    %13 = vector.broadcast %cst_6 : f32 to vector<1x128xf32>
    %14 = arith.mulf %13, %12 : vector<1x128xf32>
    %15 = arith.subf %11, %14 : vector<1x128xf32>
    %cst_7 = arith.constant 1.250000e-01 : f32
    %16 = vector.broadcast %cst_7 : f32 to vector<1x128xf32>
    %17 = arith.mulf %15, %16 : vector<1x128xf32>
    %cst_8 = arith.constant 0.000000e+00 : f32
    %18 = vector.broadcast %cst_8 : f32 to vector<1x128xf32>
    %19 = arith.maximumf %17, %18 : vector<1x128xf32>
    %c0_9 = arith.constant 0 : index
    %c0_10 = arith.constant 0 : index
    %20 = vector.load %arg2[%c0_9, %c0_10] : memref<1x128xf32, #tpu.memory_space<vmem>>, vector<1x128xf32>
    %cst_11 = arith.constant 9.99999974E-6 : f32
    %21 = vector.broadcast %cst_11 : f32 to vector<1x128xf32>
    %22 = arith.addf %19, %21 : vector<1x128xf32>
    %23 = math.rsqrt %22 : vector<1x128xf32>
    %24 = arith.mulf %20, %23 : vector<1x128xf32>
    %c0_12 = arith.constant 0 : index
    %c0_13 = arith.constant 0 : index
    %25 = vector.load %arg3[%c0_12, %c0_13] : memref<1x128xf32, #tpu.memory_space<vmem>>, vector<1x128xf32>
    %26 = arith.mulf %6, %24 : vector<1x128xf32>
    %27 = arith.subf %25, %26 : vector<1x128xf32>
    %28 = vector.broadcast %24 : vector<1x128xf32> to vector<8x128xf32>
    %29 = arith.mulf %2, %28 : vector<8x128xf32>
    %30 = vector.broadcast %27 : vector<1x128xf32> to vector<8x128xf32>
    %31 = arith.addf %29, %30 : vector<8x128xf32>
    %cst_14 = arith.constant 0.000000e+00 : f32
    %32 = vector.broadcast %cst_14 : f32 to vector<8x128xf32>
    %33 = arith.maximumf %31, %32 : vector<8x128xf32>
    %c0_15 = arith.constant 0 : index
    %c0_16 = arith.constant 0 : index
    %34 = vector.load %arg4[%c0_15, %c0_16] : memref<8x128xf32, #tpu.memory_space<vmem>>, vector<8x128xf32>
    tpu.vector_store %arg4[%c0_15, %c0_16], %33 {strides = array<i32>} : memref<8x128xf32, #tpu.memory_space<vmem>>, vector<8x128xf32>,
    return
  }
}

</mosaic_0001>

<bundles_post_ra>
// kernel: _residual_forward_impl.1
= control target key start
LH: loop header
LB: loop body
LE: loop exit
PB: predicated region body
PF: predicated region fallthrough
CT: control target
= control target key end

     0   :  { %v207_v0 = vmov 0.0   ;;  %vm208_vm0 = vmmov 0   ;;  %v132_v41 = vlaneseq  ;;  %s294_s1 = inlined_call_operand.vmem [shape: f32[128,128], index: 1, kind: input, shape index: {}]   ;;  %s295_s0 = inlined_call_operand.vmem [shape: f32[8,128], index: 0, kind: input, shape index: {}]   ;;  %s296_s2 = inlined_call_operand.vmem [shape: f32[1,128], index: 2, kind: input, shape index: {}]   ;;  %s297_s3 = inlined_call_operand.vmem [shape: f32[1,128], index: 3, kind: input, shape index: {}]   ;;  %s298_s4 = inlined_call_operand.vmem [shape: f32[8,128], index: 4, kind: output, shape index: {}]  }
   0x1   :  { %168 = vmatprep.subr.mxu0 %v207_v0  ;;  %v33_v1 = vld [vmem:[%s294_s1 + $0x78] sm:$0xff]  ;;  %v32_v2 = vld [vmem:[%s294_s1 + $0x70] sm:$0xff]  ;;  %200 = vmatprep.mubr.msk.f32.mxu0 %vm208_vm0, %v207_v0  ;;  %v31_v3 = vld [vmem:[%s294_s1 + $0x68] sm:$0xff] }
   0x2   :  { %169 = vmatpush3.msra.mxu0 %v33_v1  ;;  %v30_v4 = vld [vmem:[%s294_s1 + $0x60] sm:$0xff]  ;;  %v29_v5 = vld [vmem:[%s294_s1 + $0x58] sm:$0xff]  ;;  %v28_v6 = vld [vmem:[%s294_s1 + $0x50] sm:$0xff]  ;;  %v133_v42 = vshrl.u32 %v132_v41, 7 }
   0x3   :  { %170 = vmatprep.subr.mxu0 %v207_v0  ;;  %v27_v7 = vld [vmem:[%s294_s1 + $0x48] sm:$0xff]  ;;  %v26_v8 = vld [vmem:[%s294_s1 + $0x40] sm:$0xff]  ;;  %v25_v9 = vld [vmem:[%s294_s1 + $0x38] sm:$0xff] }
   0x4   :  { %171 = vmatpush3.msra.mxu0 %v32_v2  ;;  %v24_v10 = vld [vmem:[%s294_s1 + $0x30] sm:$0xff]  ;;  %v23_v11 = vld [vmem:[%s294_s1 + $0x28] sm:$0xff]  ;;  %v22_v12 = vld [vmem:[%s294_s1 + $0x20] sm:$0xff]  ;;  %v134_v44 = vsub.s32 0, %v133_v42 }
   0x5   :  { %172 = vmatprep.subr.mxu0 %v207_v0  ;;  %v21_v13 = vld [vmem:[%s294_s1 + $0x18] sm:$0xff]  ;;  %v20_v14 = vld [vmem:[%s294_s1 + $0x10] sm:$0xff]  ;;  %v19_v15 = vld [vmem:[%s294_s1 + $0x8] sm:$0xff] }
   0x6   :  { %173 = vmatpush3.msra.mxu0 %v31_v3  ;;  %v18_v16 = vld [vmem:[%s294_s1] sm:$0xff] }
   0x7   :  { %174 = vmatprep.subr.mxu0 %v207_v0  ;;  %v17_v17 = vld [vmem:[%s295_s0] sm:$0xff] }
   0x8   :  { %175 = vmatpush3.msra.mxu0 %v30_v4  ;;  %v124_v43 = vld [vmem:[%s296_s2] sm:$0x1] }
   0x9   :  { %176 = vmatprep.subr.mxu0 %v207_v0  ;;  %v128_v47 = vld [vmem:[%s297_s3] sm:$0x1] }
   0xa   :  { %177 = vmatpush3.msra.mxu0 %v29_v5 }
   0xb   :  { %178 = vmatprep.subr.mxu0 %v207_v0 }
   0xc   :  { %179 = vmatpush3.msra.mxu0 %v28_v6 }
   0xd   :  { %180 = vmatprep.subr.mxu0 %v207_v0 }
   0xe   :  { %181 = vmatpush3.msra.mxu0 %v27_v7 }
   0xf   :  { %182 = vmatprep.subr.mxu0 %v207_v0 }
  0x10   :  { %183 = vmatpush3.msra.mxu0 %v26_v8 }
  0x11   :  { %184 = vmatprep.subr.mxu0 %v207_v0 }
  0x12   :  { %185 = vmatpush3.msra.mxu0 %v25_v9 }
  0x13   :  { %186 = vmatprep.subr.mxu0 %v207_v0 }
  0x14   :  { %187 = vmatpush3.msra.mxu0 %v24_v10 }
  0x15   :  { %188 = vmatprep.subr.mxu0 %v207_v0 }
  0x16   :  { %189 = vmatpush3.msra.mxu0 %v23_v11 }
  0x17   :  { %190 = vmatprep.subr.mxu0 %v207_v0 }
  0x18   :  { %191 = vmatpush3.msra.mxu0 %v22_v12 }
  0x19   :  { %192 = vmatprep.subr.mxu0 %v207_v0 }
  0x1a   :  { %193 = vmatpush3.msra.mxu0 %v21_v13 }
  0x1b   :  { %194 = vmatprep.subr.mxu0 %v207_v0 }
  0x1c   :  { %195 = vmatpush3.msra.mxu0 %v20_v14 }
  0x1d   :  { %196 = vmatprep.subr.mxu0 %v207_v0 }
  0x1e   :  { %197 = vmatpush3.msra.mxu0 %v19_v15 }
  0x1f   :  { %198 = vmatprep.subr.mxu0 %v207_v0 }
  0x20   :  { %199 = vmatpush3.msra.mxu0 %v18_v16 }
  0x21   :  { %201 = vmatmul.mubr.f32.vlgmr.msra.gmra.mxu0 %v17_v17 }
  0xe1   :  { %v100_v18 = vpop.f32.mrf.mxu0 }
  0xe2   :  { %v104_v19 = vrot.slane %v100_v18, 4 }
  0xe3   :  { %v202_v20 = vpop.f32.mrf.mxu0 }
  0xe4   :  { %v105_v21 = vadd.f32 %v104_v19, %v100_v18 }
  0xe6   :  { %v106_v22 = vrot.slane %v105_v21, 2 }
  0xe8   :  { %v107_v23 = vadd.f32 %v106_v22, %v105_v21 }
  0xea   :  { %v108_v24 = vrot.slane %v107_v23, 1 }
  0xec   :  { %v109_v25 = vadd.f32 %v108_v24, %v107_v23 }
  0xee   :  { %v110_v26 = vmul.f32 0.125, %v109_v25 }
  0xf0   :  { %v111_v27 = vsub.f32 %v100_v18, %v110_v26  ;;  %v119_v33 = vmul.f32 %v110_v26, %v110_v26 }
  0xf2   :  { %v112_v28 = vmul.f32 %v111_v27, %v111_v27  ;;  %v120_v36 = vmul.f32 0.0, %v119_v33 }
  0xf4   :  { %v113_v29 = vrot.slane %v112_v28, 4 }
  0xf6   :  { %v114_v30 = vadd.f32 %v113_v29, %v112_v28 }
  0xf8   :  { %v115_v31 = vrot.slane %v114_v30, 2 }
  0xfa   :  { %v116_v32 = vadd.f32 %v115_v31, %v114_v30 }
  0xfc   :  { %v117_v34 = vrot.slane %v116_v32, 1 }
  0xfe   :  { %v118_v35 = vadd.f32 %v117_v34, %v116_v32 }
 0x100   :  { %v121_v37 = vsub.f32 %v118_v35, %v120_v36 }
 0x102   :  { %v122_v38 = vmul.f32 0.125, %v121_v37 }
 0x104   :  { %v123_v39 = vmax.f32 %v122_v38, 0.0 }
 0x106   :  { %v125_v40 = vadd.f32 1e-05, %v123_v39 }
 0x108   :  { %205 = vrsqrt.f32 %v125_v40 }
 0x115   :  { %v206_v45 = vpop.eup %205 }
 0x116   :  { %v127_v46 = vmul.f32 %v206_v45, %v124_v43 }
 0x118   :  { %v129_v48 = vmul.f32 %v127_v46, %v110_v26  ;;  %v135_v49 = vrot.slane %v127_v46, %v134_v44 }
 0x11a   :  { %v130_v50 = vsub.f32 %v128_v47, %v129_v48  ;;  %v137_v51 = vmul.f32 %v135_v49, %v100_v18 }
 0x11c   :  { %v142_v52 = vrot.slane %v130_v50, %v134_v44 }
 0x11e   :  { %v144_v53 = vadd.f32 %v142_v52, %v137_v51 }
 0x120   :  { %v145_v54 = vmax.f32 %v144_v53, 0.0 }
 0x122   :  { %146 = vst [vmem:[%s298_s4] sm:$0xff] %v145_v54 }

</bundles_post_ra>
